<compile_context>
chip_gen: v6e
topology: v6e:2x2x1
jax: 0.10.0
libtpu: 0.0.40
codegen_flags: <defaults>
</compile_context>

<pallas_src>
import functools

import jax
import jax.numpy as jnp
from jax import lax
from jax.experimental import pallas as pl
from jax.experimental.pallas import tpu as pltpu

_LANES = 128
_SUBLANES = 8


def _round_up(n, m):
    return ((n + m - 1) // m) * m


def _pick_tiling(batch, block_b, max_sub=128):
    """Choose (row-tile tb, in-kernel sub-tile, padded batch).

    tb covers ceil(B / n_tiles) rows rounded up to a sublane multiple, so
    common batch sizes need zero padded rows; the sub-tile is the largest
    multiple-of-8 divisor of tb <= max_sub (bounds vreg live ranges).
    """
    n_tiles = max(1, pl.cdiv(batch, block_b))
    rows = pl.cdiv(batch, n_tiles)
    tb = _round_up(rows, _SUBLANES)
    sub = _SUBLANES
    for cand in range(min(tb, max_sub), _SUBLANES - 1, -_SUBLANES):
        if tb % cand == 0:
            sub = cand
            break
    b_padded = _round_up(batch, tb)
    return tb, sub, b_padded


def _batch_axis_semantics():
    # v7x has 2 TensorCores per chip and plain "parallel" does not guarantee a
    # split of the batch grid; CORE_PARALLEL does.  Other generations (1 TC)
    # keep "parallel".
    try:
        kind = jax.devices()[0].device_kind.lower()
    except Exception:
        kind = ""
    if "v7" in kind:
        return (pltpu.CORE_PARALLEL,)
    return ("parallel",)


def _qvalue_kernel(x_ref, w1b_ref, w2_ref, b2_ref, out_ref, *,
                   state_dim, action_dim, sub_rows):
    # x_ref   : (tb, state_dim)          f32
    # w1b_ref : (state_dim + 1, hidden)  f32   (last row is b1)
    # w2_ref  : (hidden, 128)            f32   (columns >= action_dim are zero)
    # b2_ref  : (1, action_dim)          f32
    # out_ref : (tb, action_dim)         f32
    w1b = w1b_ref[...]
    b2 = b2_ref[...]
    hidden = w1b.shape[1]
    n_sub = out_ref.shape[0] // sub_rows

    def body(s, carry):
        r = pl.multiple_of(s * sub_rows, sub_rows)
        x = x_ref[pl.ds(r, sub_rows), :]                       # (sub, S)

        # fc1 on the VPU: K = state_dim is tiny (a >96%-padded MXU pass is not
        # worth it); the bias row of w1b initializes h.
        h = jnp.broadcast_to(w1b[state_dim:state_dim + 1, :], (sub_rows, hidden))
        for k in range(state_dim):                             # static unroll, K=4
            h = h + x[:, k:k + 1] * w1b[k:k + 1, :]
        h = jnp.maximum(h, 0.0)

        # fc2 on the MXU, all-f32 (K = hidden).  Only the first action_dim
        # columns of the lane-padded result are real; store just those so the
        # HBM writeback stays (sub, action_dim).
        q = jnp.dot(h, w2_ref[...], preferred_element_type=jnp.float32)
        out_ref[pl.ds(r, sub_rows), :] = q[:, :action_dim] + b2
        return carry

    # Strip-mine the row tile so h/q live ranges stay small (no vreg spills)
    # while the DMA tile (tb rows) stays large.
    lax.fori_loop(0, n_sub, body, 0, unroll=min(n_sub, 8))


def qvalue_net_forward(x, w1, b1, w2, b2, *, block_b=2048):
    """x: (B, state_dim) f32 -> (B, action_dim) f32.

    Weights are stored transposed vs. torch: W1 (state_dim, hidden),
    W2 (hidden, action_dim).
    """
    B, state_dim = x.shape
    hidden_dim = w1.shape[1]
    action_dim = w2.shape[1]

    # Trace-time parameter prep (weights are tiny; done once per jit).
    w1b = jnp.concatenate([w1, b1.reshape(1, hidden_dim)], axis=0)        # f32
    n_pad = _round_up(action_dim, _LANES)   # lane-pad only the resident weight
    w2p = jnp.zeros((hidden_dim, n_pad), jnp.float32).at[:, :action_dim].set(
        w2.astype(jnp.float32))
    b2r = b2.reshape(1, action_dim).astype(jnp.float32)

    tb, sub, b_padded = _pick_tiling(B, block_b)
    if b_padded != B:
        x = jnp.pad(x, ((0, b_padded - B), (0, 0)))
    grid = (b_padded // tb,)

    kernel = functools.partial(_qvalue_kernel, state_dim=state_dim,
                               action_dim=action_dim, sub_rows=sub)

    out = pl.pallas_call(
        kernel,
        out_shape=jax.ShapeDtypeStruct((b_padded, action_dim), jnp.float32),
        grid_spec=pltpu.PrefetchScalarGridSpec(
            num_scalar_prefetch=0,
            grid=grid,
            in_specs=[
                pl.BlockSpec((tb, state_dim), lambda i: (i, 0)),           # x tile
                pl.BlockSpec((state_dim + 1, hidden_dim), lambda i: (0, 0)),  # W1|b1 resident
                pl.BlockSpec((hidden_dim, n_pad), lambda i: (0, 0)),       # W2 resident (f32)
                pl.BlockSpec((1, action_dim), lambda i: (0, 0)),           # b2 resident
            ],
            out_specs=pl.BlockSpec((tb, action_dim), lambda i: (i, 0)),    # narrow writeback
        ),
        compiler_params=pltpu.CompilerParams(
            dimension_semantics=_batch_axis_semantics(),
        ),
    )(x, w1b, w2p, b2r)

    if b_padded != B:
        out = out[:B]
    return out


def init_params(key, state_dim, hidden_dim, action_dim):
    """Deterministic init mimicking torch.nn.Linear (uniform +-1/sqrt(fan_in))."""
    k1, k2, k3, k4 = jax.random.split(key, 4)
    bound1 = 1.0 / jnp.sqrt(state_dim)
    bound2 = 1.0 / jnp.sqrt(hidden_dim)
    w1 = jax.random.uniform(k1, (state_dim, hidden_dim), jnp.float32, -bound1, bound1)
    b1 = jax.random.uniform(k2, (hidden_dim,), jnp.float32, -bound1, bound1)
    w2 = jax.random.uniform(k3, (hidden_dim, action_dim), jnp.float32, -bound2, bound2)
    b2 = jax.random.uniform(k4, (action_dim,), jnp.float32, -bound2, bound2)
    return w1, b1, w2, b2


def _reference(x, w1, b1, w2, b2):
    return jnp.maximum(x @ w1 + b1, 0.0) @ w2 + b2


if __name__ == "__main__":
    # CartPole-v0: state_dim=4, action_dim=2, hidden_dim=128 (per the module).
    state_dim, hidden_dim, action_dim = 4, 128, 2

    key = jax.random.PRNGKey(0)
    kx, kp, kx2 = jax.random.split(key, 3)
    w1, b1, w2, b2 = init_params(kp, state_dim, hidden_dim, action_dim)

    # Act-path batch (env interaction): single tiny tile.
    x = jax.random.normal(kx, (2, state_dim), jnp.float32)
    out = jax.block_until_ready(qvalue_net_forward(x, w1, b1, w2, b2))
    ref = _reference(x, w1, b1, w2, b2)
    assert out.shape == (2, action_dim)
    # All math is f32; tolerance only covers MXU f32 accumulation-order noise.
    assert jnp.allclose(out, ref, atol=1e-2, rtol=1e-2), (out, ref)

    # Replay-buffer batch: one 600-row tile, strip-mined into 120-row sub-tiles
    # inside the kernel (no padded rows, no wrapper pad/slice).
    xb = jax.random.normal(kx2, (600, state_dim), jnp.float32)
    out_b = jax.block_until_ready(qvalue_net_forward(xb, w1, b1, w2, b2))
    ref_b = _reference(xb, w1, b1, w2, b2)
    assert out_b.shape == (600, action_dim)
    assert jnp.allclose(out_b, ref_b, atol=1e-2, rtol=1e-2)

    # Same batch forced onto a multi-step grid (3 tiles x 200 rows, still no
    # padded rows) to exercise the streamed-x / resident-weight pipeline.
    out_c = jax.block_until_ready(
        qvalue_net_forward(xb, w1, b1, w2, b2, block_b=256))
    assert jnp.allclose(out_c, ref_b, atol=1e-2, rtol=1e-2)

    print("KERNEL_OK")
</pallas_src>

<mosaic_0001>
module attributes {stable_mosaic.version = 11 : i64} {
  func.func @_qvalue_kernel(%arg0: i32, %arg1: memref<8x4xf32, #tpu.memory_space<vmem>>, %arg2: memref<5x128xf32, #tpu.memory_space<vmem>>, %arg3: memref<128x128xf32, #tpu.memory_space<vmem>>, %arg4: memref<1x2xf32, #tpu.memory_space<vmem>>, %arg5: memref<8x2xf32, #tpu.memory_space<vmem>>) attributes {dimension_semantics = [#tpu.dimension_semantics<parallel>], iteration_bounds = array<i64: 1>, scalar_prefetch = 0 : i64, scratch_operands = 0 : i64, tpu.core_type = #tpu.core_type<tc>, window_params = [{transform_indices = @transform_0, window_bounds = array<i64: 8, 4>}, {pipeline_mode = #tpu.pipeline_mode<synchronous>, transform_indices = @transform_1, window_bounds = array<i64: 5, 128>}, {pipeline_mode = #tpu.pipeline_mode<synchronous>, transform_indices = @transform_2, window_bounds = array<i64: 128, 128>}, {pipeline_mode = #tpu.pipeline_mode<synchronous>, transform_indices = @transform_3, window_bounds = array<i64: 1, 2>}, {transform_indices = @transform_4, window_bounds = array<i64: 8, 2>}]} {
    %c0 = arith.constant 0 : index
    %c0_0 = arith.constant 0 : index
    %0 = vector.load %arg2[%c0, %c0_0] : memref<5x128xf32, #tpu.memory_space<vmem>>, vector<5x128xf32>
    %c0_1 = arith.constant 0 : index
    %c0_2 = arith.constant 0 : index
    %1 = vector.load %arg4[%c0_1, %c0_2] : memref<1x2xf32, #tpu.memory_space<vmem>>, vector<1x2xf32>
    %c0_i32 = arith.constant 0 : i32
    %c8_i32 = arith.constant 8 : i32
    %2 = arith.muli %c0_i32, %c8_i32 : i32
    %3 = tpu.assume_multiple %2, 8 : i32
    %4 = arith.index_cast %3 : i32 to index
    %c0_3 = arith.constant 0 : index
    %5 = vector.load %arg1[%4, %c0_3] : memref<8x4xf32, #tpu.memory_space<vmem>>, vector<8x4xf32>
    %6 = vector.extract_strided_slice %0 {offsets = [4, 0], sizes = [1, 128], strides = [1, 1]} : vector<5x128xf32> to vector<1x128xf32>
    %7 = vector.shape_cast %6 : vector<1x128xf32> to vector<1x128xf32>
    %8 = vector.broadcast %7 : vector<1x128xf32> to vector<8x128xf32>
    %9 = vector.extract_strided_slice %5 {offsets = [0, 0], sizes = [8, 1], strides = [1, 1]} : vector<8x4xf32> to vector<8x1xf32>
    %10 = vector.extract_strided_slice %0 {offsets = [0, 0], sizes = [1, 128], strides = [1, 1]} : vector<5x128xf32> to vector<1x128xf32>
    %11 = vector.broadcast %9 : vector<8x1xf32> to vector<8x128xf32>
    %12 = vector.broadcast %10 : vector<1x128xf32> to vector<8x128xf32>
    %13 = arith.mulf %11, %12 : vector<8x128xf32>
    %14 = arith.addf %8, %13 : vector<8x128xf32>
    %15 = vector.extract_strided_slice %5 {offsets = [0, 1], sizes = [8, 1], strides = [1, 1]} : vector<8x4xf32> to vector<8x1xf32>
    %16 = vector.extract_strided_slice %0 {offsets = [1, 0], sizes = [1, 128], strides = [1, 1]} : vector<5x128xf32> to vector<1x128xf32>
    %17 = vector.broadcast %15 : vector<8x1xf32> to vector<8x128xf32>
    %18 = vector.broadcast %16 : vector<1x128xf32> to vector<8x128xf32>
    %19 = arith.mulf %17, %18 : vector<8x128xf32>
    %20 = arith.addf %14, %19 : vector<8x128xf32>
    %21 = vector.extract_strided_slice %5 {offsets = [0, 2], sizes = [8, 1], strides = [1, 1]} : vector<8x4xf32> to vector<8x1xf32>
    %22 = vector.extract_strided_slice %0 {offsets = [2, 0], sizes = [1, 128], strides = [1, 1]} : vector<5x128xf32> to vector<1x128xf32>
    %23 = vector.broadcast %21 : vector<8x1xf32> to vector<8x128xf32>
    %24 = vector.broadcast %22 : vector<1x128xf32> to vector<8x128xf32>
    %25 = arith.mulf %23, %24 : vector<8x128xf32>
    %26 = arith.addf %20, %25 : vector<8x128xf32>
    %27 = vector.extract_strided_slice %5 {offsets = [0, 3], sizes = [8, 1], strides = [1, 1]} : vector<8x4xf32> to vector<8x1xf32>
    %28 = vector.extract_strided_slice %0 {offsets = [3, 0], sizes = [1, 128], strides = [1, 1]} : vector<5x128xf32> to vector<1x128xf32>
    %29 = vector.broadcast %27 : vector<8x1xf32> to vector<8x128xf32>
    %30 = vector.broadcast %28 : vector<1x128xf32> to vector<8x128xf32>
    %31 = arith.mulf %29, %30 : vector<8x128xf32>
    %32 = arith.addf %26, %31 : vector<8x128xf32>
    %cst = arith.constant 0.000000e+00 : f32
    %33 = vector.broadcast %cst : f32 to vector<8x128xf32>
    %34 = arith.maximumf %32, %33 : vector<8x128xf32>
    %c0_4 = arith.constant 0 : index
    %c0_5 = arith.constant 0 : index
    %35 = vector.load %arg3[%c0_4, %c0_5] : memref<128x128xf32, #tpu.memory_space<vmem>>, vector<128x128xf32>
    %cst_6 = arith.constant dense<0.000000e+00> : vector<8x128xf32>
    %36 = tpu.matmul %34, %35, %cst_6 {dimension_numbers = #tpu.dot_dimension_numbers<[1], [0], [0], [1], [0, 0, 1, 1], [], []>} : vector<8x128xf32>, vector<128x128xf32>, vector<8x128xf32> -> vector<8x128xf32>
    %37 = vector.extract_strided_slice %36 {offsets = [0, 0], sizes = [8, 2], strides = [1, 1]} : vector<8x128xf32> to vector<8x2xf32>
    %38 = vector.broadcast %1 : vector<1x2xf32> to vector<8x2xf32>
    %39 = arith.addf %37, %38 : vector<8x2xf32>
    %40 = arith.index_cast %3 : i32 to index
    %c0_7 = arith.constant 0 : index
    %41 = vector.load %arg5[%40, %c0_7] : memref<8x2xf32, #tpu.memory_space<vmem>>, vector<8x2xf32>
    tpu.vector_store %arg5[%40, %c0_7], %39 {strides = array<i32>} : memref<8x2xf32, #tpu.memory_space<vmem>>, vector<8x2xf32>,
    %c1_i32 = arith.constant 1 : i32
    return
  }
  func.func @transform_0(%arg0: i32) -> (i32, i32) {
    %c0_i32 = arith.constant 0 : i32
    %c0_i32_0 = arith.constant 0 : i32
    return %arg0, %c0_i32 : i32, i32
  }
  func.func @transform_1(%arg0: i32) -> (i32, i32) {
    %c0_i32 = arith.constant 0 : i32
    %c0_i32_0 = arith.constant 0 : i32
    %c0_i32_1 = arith.constant 0 : i32
    return %c0_i32, %c0_i32_0 : i32, i32
  }
  func.func @transform_2(%arg0: i32) -> (i32, i32) {
    %c0_i32 = arith.constant 0 : i32
    %c0_i32_0 = arith.constant 0 : i32
    %c0_i32_1 = arith.constant 0 : i32
    return %c0_i32, %c0_i32_0 : i32, i32
  }
  func.func @transform_3(%arg0: i32) -> (i32, i32) {
    %c0_i32 = arith.constant 0 : i32
    %c0_i32_0 = arith.constant 0 : i32
    %c0_i32_1 = arith.constant 0 : i32
    return %c0_i32, %c0_i32_0 : i32, i32
  }
  func.func @transform_4(%arg0: i32) -> (i32, i32) {
    %c0_i32 = arith.constant 0 : i32
    %c0_i32_0 = arith.constant 0 : i32
    return %arg0, %c0_i32 : i32, i32
  }
}

</mosaic_0001>

<bundles_post_ra>
// kernel: tpu_custom_call.1
= control target key start
LH: loop header
LB: loop body
LE: loop exit
PB: predicated region body
PF: predicated region fallthrough
CT: control target
= control target key end

     0   :  { %9 = vsyncpa [#allocation3], 0  ;;  %s269_s15 = smov [#allocation2]   ;;  %s318_s0 = inlined_call_operand.vmem [shape: f32[8,4], index: 0, kind: input, shape index: {}]   ;;  %s319_s1 = inlined_call_operand.vmem [shape: f32[5,128], index: 1, kind: input, shape index: {}]   ;;  %s320_s2 = inlined_call_operand.hbm [shape: f32[128,128], index: 2, kind: input, shape index: {}]   ;;  %s321_s3 = inlined_call_operand.vmem [shape: f32[1,2], index: 3, kind: input, shape index: {}]   ;;  %s322_s4 = inlined_call_operand.vmem [shape: f32[8,2], index: 4, kind: output, shape index: {}]  }
   0x1   :  { %s19_s16 = sshll.u32 %s269_s15, 4  ;;  %s20_s16 = int_to_ptr.vmem [resolvable:$true] %s19_s16 }
   0x2   :  { %s255_s17 = scalar_lea.vmem %s20_s16, 2048  ;;  %p260_p1 = scmp.lt.s32.totalorder %s20_s16, %s20_s16 }
   0x3   :  { %p256_p0 = scmp.ne.s32.totalorder %s20_s16, %s255_s17  ;;  %p261_p2 = scmp.lt.s32.totalorder %s255_s17, %s255_s17 }
   0x5   :  { %p262_p3 = por %p261_p2, %p260_p1 }
   0x7   :  { %p263_p4 = pnand %p262_p3, %p256_p0 }
   0x9   :  { %266 = shalt.err (!%p263_p4)
}
   0xa   :  { %s270_s18 = smov 128   ;;  %s271_s19 = smov 8  }
   0xb   :  { %25 = dma.hbm_to_vmem [thread:$0]  %s320_s2, 2048, %s20_s16, [#allocation3], %s270_s18, %s270_s18, %s271_s19  }
   0xc   :  { %267 = dma.done.wait [#allocation3], 2048  }
   0xd   :  { %268 = vsyncadd [#allocation3], 4294965248  ;;  %v272_v0 = vmov 0   ;;  %v273_v1 = vmov 2   ;;  %v274_v2 = vmov 0.0   ;;  %v33_v3 = vld [vmem:[%s318_s0] sm:$0xff]  ;;  %v34_v22 = vlaneseq }
   0xe   :  { %242 = vset.pattern.permute.xlu0 %v272_v0  ;;  %244 = vset.pattern.permute.xlu1 %v273_v1  ;;  %v95_v4 = vld [vmem:[#allocation2 + $0x78] sm:$0xff]  ;;  %v94_v5 = vld [vmem:[#allocation2 + $0x70] sm:$0xff]  ;;  %v275_v6 = vmov 1   ;;  %v276_v7 = vmov 3   ;;  %v93_v8 = vld [vmem:[#allocation2 + $0x68] sm:$0xff]  ;;  %vm277_vm0 = vmmov 0  }
   0xf   :  { %198 = vmatprep.subr.mxu0 %v274_v2  ;;  %40 = vperm.xlu0 %242, %v33_v3   ;;  %v92_v9 = vld [vmem:[#allocation2 + $0x60] sm:$0xff]  ;;  %v91_v10 = vld [vmem:[#allocation2 + $0x58] sm:$0xff]  ;;  %v90_v11 = vld [vmem:[#allocation2 + $0x50] sm:$0xff]  ;;  %v35_v23 = vshrl.u32 %v34_v22, 7  ;;  %vm173_vm1 = vcmask 15360  }
  0x10   :  { %60 = vperm.xlu1 %244, %v33_v3   ;;  %199 = vmatpush3.msra.mxu0 %v95_v4  ;;  %v89_v12 = vld [vmem:[#allocation2 + $0x48] sm:$0xff]  ;;  %v88_v13 = vld [vmem:[#allocation2 + $0x40] sm:$0xff]  ;;  %v87_v14 = vld [vmem:[#allocation2 + $0x38] sm:$0xff] }
  0x11   :  { %200 = vmatprep.subr.mxu0 %v274_v2  ;;  %230 = vmatprep.mubr.msk.f32.mxu0 %vm277_vm0, %v274_v2  ;;  %v86_v15 = vld [vmem:[#allocation2 + $0x30] sm:$0xff]  ;;  %v85_v16 = vld [vmem:[#allocation2 + $0x28] sm:$0xff]  ;;  %v84_v17 = vld [vmem:[#allocation2 + $0x20] sm:$0xff]  ;;  %v45_v24 = vsub.s32 0, %v35_v23  ;;  %v36_v26 = vsub.s32 4, %v35_v23  ;;  %v55_v28 = vsub.s32 1, %v35_v23 }
  0x12   :  { %201 = vmatpush3.msra.mxu0 %v94_v5  ;;  %v83_v18 = vld [vmem:[#allocation2 + $0x18] sm:$0xff]  ;;  %v82_v19 = vld [vmem:[#allocation2 + $0x10] sm:$0xff]  ;;  %v81_v20 = vld [vmem:[#allocation2 + $0x8] sm:$0xff]  ;;  %v65_v30 = vsub.s32 2, %v35_v23  ;;  %v75_v32 = vsub.s32 3, %v35_v23 }
  0x13   :  { %243 = vset.pattern.permute.xlu0 %v275_v6  ;;  %202 = vmatprep.subr.mxu0 %v274_v2  ;;  %v80_v21 = vld [vmem:[#allocation2] sm:$0xff] }
  0x14   :  { %245 = vset.pattern.permute.xlu1 %v276_v7  ;;  %50 = vperm.xlu0 %243, %v33_v3   ;;  %v31_v25 = vld [vmem:[%s319_s1] sm:$0x1f] }
  0x15   :  { %70 = vperm.xlu1 %245, %v33_v3   ;;  %203 = vmatpush3.msra.mxu0 %v93_v8  ;;  %v46_v27 = vrot.slane %v31_v25, %v45_v24  ;;  %v37_v33 = vrot.slane %v31_v25, %v36_v26  ;;  %v56_v35 = vrot.slane %v31_v25, %v55_v28  ;;  %v180_v48 = vld [vmem:[%s321_s3] ss:$0 sm:$0xff] }
  0x16   :  { %204 = vmatprep.subr.mxu0 %v274_v2  ;;  %v66_v36 = vrot.slane %v31_v25, %v65_v30  ;;  %v76_v37 = vrot.slane %v31_v25, %v75_v32 }
  0x17   :  { %205 = vmatpush3.msra.mxu0 %v92_v9 }
  0x18   :  { %246 = vset.pattern.permute.xlu0 %v276_v7  ;;  %206 = vmatprep.subr.mxu0 %v274_v2 }
  0x19   :  { %207 = vmatpush3.msra.mxu0 %v91_v10 }
  0x1a   :  { %208 = vmatprep.subr.mxu0 %v274_v2 }
  0x1b   :  { %209 = vmatpush3.msra.mxu0 %v90_v11 }
  0x1c   :  { %210 = vmatprep.subr.mxu0 %v274_v2 }
  0x1d   :  { %211 = vmatpush3.msra.mxu0 %v89_v12 }
  0x1e   :  { %212 = vmatprep.subr.mxu0 %v274_v2 }
  0x1f   :  { %213 = vmatpush3.msra.mxu0 %v88_v13 }
  0x20   :  { %214 = vmatprep.subr.mxu0 %v274_v2 }
  0x21   :  { %215 = vmatpush3.msra.mxu0 %v87_v14 }
  0x22   :  { %216 = vmatprep.subr.mxu0 %v274_v2 }
  0x23   :  { %217 = vmatpush3.msra.mxu0 %v86_v15 }
  0x24   :  { %218 = vmatprep.subr.mxu0 %v274_v2 }
  0x25   :  { %219 = vmatpush3.msra.mxu0 %v85_v16 }
  0x26   :  { %220 = vmatprep.subr.mxu0 %v274_v2 }
  0x27   :  { %221 = vmatpush3.msra.mxu0 %v84_v17 }
  0x28   :  { %222 = vmatprep.subr.mxu0 %v274_v2 }
  0x29   :  { %223 = vmatpush3.msra.mxu0 %v83_v18 }
  0x2a   :  { %224 = vmatprep.subr.mxu0 %v274_v2 }
  0x2b   :  { %225 = vmatpush3.msra.mxu0 %v82_v19 }
  0x2c   :  { %226 = vmatprep.subr.mxu0 %v274_v2 }
  0x2d   :  { %227 = vmatpush3.msra.mxu0 %v81_v20 }
  0x2e   :  { %228 = vmatprep.subr.mxu0 %v274_v2 }
  0x2f   :  { %229 = vmatpush3.msra.mxu0 %v80_v21 }
  0x8a   :  { %v41_v29 = vpop.permute.xlu0 %40 }
  0x8b   :  { %v61_v31 = vpop.permute.xlu1 %60  ;;  %v47_v34 = vmul.f32 %v46_v27, %v41_v29 }
  0x8c   :  { %v67_v42 = vmul.f32 %v66_v36, %v61_v31 }
  0x8d   :  { %v48_v40 = vadd.f32 %v47_v34, %v37_v33 }
  0x8f   :  { %v51_v38 = vpop.permute.xlu0 %50 }
  0x90   :  { %v71_v39 = vpop.permute.xlu1 %70  ;;  %v57_v41 = vmul.f32 %v56_v35, %v51_v38 }
  0x91   :  { %v77_v44 = vmul.f32 %v76_v37, %v71_v39 }
  0x92   :  { %v58_v43 = vadd.f32 %v57_v41, %v48_v40 }
  0x94   :  { %v68_v45 = vadd.f32 %v67_v42, %v58_v43 }
  0x96   :  { %v78_v46 = vadd.f32 %v77_v44, %v68_v45 }
  0x98   :  { %v79_v47 = vmax.f32 %v78_v46, 0.0 }
  0x9a   :  { %231 = vmatmul.mubr.f32.vlgmr.msra.gmra.mxu0 %v79_v47 }
 0x15a   :  { %v162_v49 = vpop.f32.mrf.mxu0 }
 0x15b   :  { %v172_v50 = vadd.f32 %v180_v48, %v162_v49 }
 0x15c   :  { %v232_v51 = vpop.f32.mrf.mxu0 }
 0x15d   :  { %174 = vst.msk [vmem:[%s322_s4] sm:$0xff] %vm173_vm1, %v172_v50 }
 0x15e   :  { %179 = vsyncpa [#allocation3], 1 }

</bundles_post_ra>
